<compile_context>
chip_gen: v5e
topology: v5e:2x2
jax: 0.10.0
libtpu: 0.0.40
codegen_flags: <defaults>
</compile_context>

<pallas_src>
import functools

import jax
import jax.numpy as jnp
from jax import lax
from jax.experimental import pallas as pl
from jax.experimental.pallas import tpu as pltpu

EPS = 1e-5  # torch.nn.BatchNorm1d default eps


# --------------------------------------------------------------------------------------
# Tiling / budgeting helpers
# --------------------------------------------------------------------------------------

def _round_up(x, m):
    return -(-x // m) * m


def _vmem_limit_bytes():
    """Generation-aware scoped-VMEM limit: ~75% of physical VMEM (96 MiB on v5e/v6e's
    128 MiB, 48 MiB on v7x's 64 MiB)."""
    try:
        cap = int(pltpu.get_tpu_info().vmem_capacity_bytes)
    except Exception:
        cap = 64 * 1024 * 1024  # conservative (v7x-sized) fallback
    return max(32 * 1024 * 1024, (cap * 3) // 4)


def _choose_tiling(L, c_in, c_mid, c_out, vmem_limit, max_tl=None):
    """Largest lane tile TL (multiple of 128) such that double-buffered x/out blocks plus
    the f32 intermediates of the heaviest pass fit in ~half the scoped VMEM budget; L is
    padded up to a whole number of tiles (even tile count when > 1 so the stats grid can
    split across two TensorCores on v7x)."""
    per_col = 4 * (2 * c_in + 5 * c_out + 2 * c_mid)      # generous f32 bytes per column
    tl_cap = (vmem_limit // 2) // max(per_col, 1)
    tl_cap = max(128, min(8192, (tl_cap // 128) * 128))
    if max_tl is not None:
        tl_cap = max(128, min(tl_cap, (max_tl // 128) * 128))
    blocks = -(-L // 128)
    n_tiles = -(-blocks // (tl_cap // 128))
    if n_tiles > 1 and n_tiles % 2:
        n_tiles += 1
    bpt = -(-blocks // n_tiles)
    tl = bpt * 128
    return tl, tl * n_tiles, n_tiles


# --------------------------------------------------------------------------------------
# Kernels.  x blocks are (1, C_in, TL): channels on sublanes, spatial tile on lanes.
# --------------------------------------------------------------------------------------

def _lane_partials(h):
    """(C, TL) -> (C, 128) partial sums over 128-lane groups: aligned VPU adds only,
    no per-tile cross-lane XLU reduce and no narrow (C, 1) store in the inner loop."""
    acc = h[:, 0:128]
    for g in range(1, h.shape[-1] // 128):
        acc = acc + h[:, g * 128:(g + 1) * 128]
    return acc


def _stats1_gram_kernel(x_ref, gram_ref, msum_ref):
    """Input-only statistics for bn1 / bn_shortcut: accumulate G = x x^T and lane-partial
    row sums of x.  The conv weights are folded in afterwards in plain JAX
    (sum_h = W m, sumsq_h = rowsum((W G) * W)); zero-padded L columns contribute nothing."""
    l = pl.program_id(2)

    @pl.when(l == 0)
    def _():
        gram_ref[...] = jnp.zeros_like(gram_ref)
        msum_ref[...] = jnp.zeros_like(msum_ref)

    x = x_ref[0]                                                      # (C_in, TL) f32
    gram_ref[0, 0] += lax.dot_general(x, x, (((1,), (1,)), ((), ())),
                                      preferred_element_type=jnp.float32)
    msum_ref[0, 0] += _lane_partials(x)


def _stats1_direct_kernel(x_ref, w_ref, sum_ref, sq_ref, *, cd):
    """Direct conv-based bn1/bn_shortcut statistics (used when C_in > fused C_out, where
    the Gram trick would cost more FLOPs).  Zero-padded L columns give h == 0."""
    l = pl.program_id(2)

    @pl.when(l == 0)
    def _():
        sum_ref[...] = jnp.zeros_like(sum_ref)
        sq_ref[...] = jnp.zeros_like(sq_ref)

    h = jnp.dot(w_ref[...], x_ref[0].astype(cd), preferred_element_type=jnp.float32)
    sum_ref[0, 0] += _lane_partials(h)
    sq_ref[0, 0] += _lane_partials(h * h)


def _stats2_kernel(x_ref, w1_ref, s1_ref, t1_ref, w2_ref, sum_ref, sq_ref,
                   *, cd, nl_half, tl, l_valid, l_padded):
    """conv1 -> fused bn1+relu -> conv2; accumulate lane-partial sum / sum-of-squares for
    bn2's batch statistics.  Padded L columns are masked so they contribute nothing."""
    hsplit = pl.program_id(0)
    l = pl.program_id(2)

    @pl.when(l == 0)
    def _():
        sum_ref[...] = jnp.zeros_like(sum_ref)
        sq_ref[...] = jnp.zeros_like(sq_ref)

    x = x_ref[0].astype(cd)
    h1 = jnp.dot(w1_ref[...], x, preferred_element_type=jnp.float32)
    a1 = jnp.maximum(s1_ref[...] * h1 + t1_ref[...], 0.0)
    if l_padded > l_valid:  # static: only emitted when L was actually padded
        base = (hsplit * nl_half + l) * tl
        lane = lax.broadcasted_iota(jnp.int32, a1.shape, 1)
        a1 = jnp.where(base + lane < l_valid, a1, 0.0)
    h2 = jnp.dot(w2_ref[...], a1.astype(cd), preferred_element_type=jnp.float32)
    sum_ref[0, 0] += _lane_partials(h2)
    sq_ref[0, 0] += _lane_partials(h2 * h2)


def _final_proj_kernel(x_ref, w1c_ref, s1_ref, t1_ref, w2_ref, s2_ref, t2_ref,
                       ss_ref, ts_ref, o_ref, *, cd, c_split):
    """Projection case: conv1 and the shortcut conv share the RHS -> one fused matmul.
    The split point c_split is a multiple of 8, so both halves are free sublane-aligned
    views.  BN applied as per-channel scale*h + shift."""
    x = x_ref[0].astype(cd)
    hc = jnp.dot(w1c_ref[...], x, preferred_element_type=jnp.float32)   # (2*Cp, TL)
    h1 = hc[:c_split]
    hs = hc[c_split:]
    a1 = jnp.maximum(s1_ref[...] * h1 + t1_ref[...], 0.0)               # relu(bn1)
    h2 = jnp.dot(w2_ref[...], a1.astype(cd), preferred_element_type=jnp.float32)
    sc = ss_ref[...] * hs + ts_ref[...]                                 # bn_shortcut
    o_ref[0] = jnp.maximum(s2_ref[...] * h2 + t2_ref[...] + sc, 0.0)    # relu(bn2 + sc)


def _final_identity_kernel(x_ref, w1_ref, s1_ref, t1_ref, w2_ref, s2_ref, t2_ref, o_ref,
                           *, cd):
    x = x_ref[0]
    h1 = jnp.dot(w1_ref[...], x.astype(cd), preferred_element_type=jnp.float32)
    a1 = jnp.maximum(s1_ref[...] * h1 + t1_ref[...], 0.0)
    h2 = jnp.dot(w2_ref[...], a1.astype(cd), preferred_element_type=jnp.float32)
    o_ref[0] = jnp.maximum(s2_ref[...] * h2 + t2_ref[...] + x, 0.0)


# --------------------------------------------------------------------------------------
# Wrapper
# --------------------------------------------------------------------------------------

def _fold(s, q, gamma, beta, count):
    """(sum, sumsq) -> fused per-channel (scale, shift) for y = scale*h + shift."""
    mean = s / count
    var = jnp.maximum(q / count - mean * mean, 0.0)   # biased batch variance, clamped
    scale = gamma * lax.rsqrt(var + EPS)
    return scale, beta - mean * scale


def residual_block(x_ncl, params, *, compute_dtype=jnp.float32, max_tl=None):
    """x_ncl: (N, C_in, L) float32 -> (N, C_out, L) float32.

    compute_dtype=jnp.bfloat16 runs the MXU matmuls in bf16 (f32 accumulation) for
    v6e/v7x throughput; this is a numeric-tolerance change vs the f32 default.
    max_tl is a tuning/testing knob capping the lane tile."""
    N, C_in, L = x_ncl.shape
    w1, w2 = params["w1"], params["w2"]                 # (C_out, C_in), (C_out, C_out)
    C_out = w1.shape[0]
    has_proj = C_in != C_out
    cd = compute_dtype

    # --- sublane-align the conv1/shortcut split: pad output channels to a multiple of 8.
    #     Padded channels get zero weights and zero gamma/beta -> zero scale/shift -> zero
    #     outputs, and are sliced away at the end.
    Cp = _round_up(C_out, 8) if has_proj else C_out

    def pad_rows(w):
        return jnp.pad(w, ((0, Cp - C_out), (0, 0)))

    def pad_vec(v):
        return jnp.pad(v.reshape(-1, 1), ((0, Cp - C_out), (0, 0)))

    w1p = pad_rows(w1)
    w2p = jnp.pad(w2, ((0, Cp - C_out), (0, Cp - C_out)))
    g1, be1 = pad_vec(params["g1"]), pad_vec(params["be1"])
    g2, be2 = pad_vec(params["g2"]), pad_vec(params["be2"])
    if has_proj:
        wsp = pad_rows(params["ws"])
        gs, bes = pad_vec(params["gs"]), pad_vec(params["bes"])
        w1c = jnp.concatenate([w1p, wsp], axis=0)       # (2*Cp, C_in): one fused matmul
    else:
        w1c = w1p
    C1 = w1c.shape[0]

    # --- VMEM-budgeted, generation-aware lane tiling; L zero-padded to whole tiles so
    #     every load/store is lane-dense (no masked vst, no ragged fallback).
    vmem_limit = _vmem_limit_bytes()
    TL, L_pad, n_l = _choose_tiling(L, C_in, C1, Cp, vmem_limit, max_tl)
    x_p = jnp.pad(x_ncl, ((0, 0), (0, 0), (0, L_pad - L))) if L_pad != L else x_ncl
    n_split = 2 if n_l >= 2 else 1      # give v7x's 2nd TensorCore work in the stats passes
    nl_half = n_l // n_split
    count = float(N * L)                # padded columns contribute zero to all stats

    # weights are VMEM-resident; cast once to the MXU compute dtype
    w1p_c, w2p_c, w1c_c = w1p.astype(cd), w2p.astype(cd), w1c.astype(cd)

    cp_stats = pltpu.CompilerParams(
        dimension_semantics=("parallel", "parallel", "arbitrary"),
        vmem_limit_bytes=vmem_limit)
    cp_final = pltpu.CompilerParams(
        dimension_semantics=("parallel", "parallel"),
        vmem_limit_bytes=vmem_limit)

    stats_grid = (n_split, N, nl_half)
    x_spec_s = pl.BlockSpec((1, C_in, TL), lambda h, n, l: (n, 0, h * nl_half + l))
    x_spec_f = pl.BlockSpec((1, C_in, TL), lambda n, l: (n, 0, l))

    def const(arr, grid_rank):  # weights / per-channel params: VMEM-resident, never refetched
        if grid_rank == 3:
            return pl.BlockSpec(arr.shape, lambda h, n, l: (0, 0))
        return pl.BlockSpec(arr.shape, lambda n, l: (0, 0))

    def acc_spec(c, w):
        return pl.BlockSpec((1, 1, c, w), lambda h, n, l: (h, n, 0, 0))

    def acc_shape(c, w):
        return jax.ShapeDtypeStruct((n_split, N, c, w), jnp.float32)

    # ---- pass 1: bn1 (and shortcut-bn) batch statistics ----
    use_gram = C_in <= C1
    if use_gram:
        gram, msum = pl.pallas_call(
            _stats1_gram_kernel,
            grid=stats_grid,
            in_specs=[x_spec_s],
            out_specs=[acc_spec(C_in, C_in), acc_spec(C_in, 128)],
            out_shape=[acc_shape(C_in, C_in), acc_shape(C_in, 128)],
            compiler_params=cp_stats,
        )(x_p)
        G = jnp.sum(gram, axis=(0, 1))                           # (C_in, C_in)
        m = jnp.sum(msum, axis=(0, 1, 3)).reshape(-1, 1)         # (C_in, 1)

        def moments(w):
            return w @ m, jnp.sum((w @ G) * w, axis=1, keepdims=True)

        s1, q1 = moments(w1p)
        if has_proj:
            s_s, q_s = moments(wsp)
    else:
        k1 = functools.partial(_stats1_direct_kernel, cd=cd)
        s1_acc, q1_acc = pl.pallas_call(
            k1,
            grid=stats_grid,
            in_specs=[x_spec_s, const(w1c_c, 3)],
            out_specs=[acc_spec(C1, 128), acc_spec(C1, 128)],
            out_shape=[acc_shape(C1, 128), acc_shape(C1, 128)],
            compiler_params=cp_stats,
        )(x_p, w1c_c)
        s_all = jnp.sum(s1_acc, axis=(0, 1, 3)).reshape(-1, 1)
        q_all = jnp.sum(q1_acc, axis=(0, 1, 3)).reshape(-1, 1)
        s1, q1 = s_all[:Cp], q_all[:Cp]
        if has_proj:
            s_s, q_s = s_all[Cp:], q_all[Cp:]

    scale1, shift1 = _fold(s1, q1, g1, be1, count)
    if has_proj:
        scale_s, shift_s = _fold(s_s, q_s, gs, bes, count)

    # ---- pass 2: bn2 batch statistics ----
    k2 = functools.partial(_stats2_kernel, cd=cd, nl_half=nl_half, tl=TL,
                           l_valid=L, l_padded=L_pad)
    s2_acc, q2_acc = pl.pallas_call(
        k2,
        grid=stats_grid,
        in_specs=[x_spec_s, const(w1p_c, 3), const(scale1, 3), const(shift1, 3),
                  const(w2p_c, 3)],
        out_specs=[acc_spec(Cp, 128), acc_spec(Cp, 128)],
        out_shape=[acc_shape(Cp, 128), acc_shape(Cp, 128)],
        compiler_params=cp_stats,
    )(x_p, w1p_c, scale1, shift1, w2p_c)
    s2 = jnp.sum(s2_acc, axis=(0, 1, 3)).reshape(-1, 1)
    q2 = jnp.sum(q2_acc, axis=(0, 1, 3)).reshape(-1, 1)
    scale2, shift2 = _fold(s2, q2, g2, be2, count)

    # ---- pass 3: full forward, lane-dense NCL output ----
    out_spec = pl.BlockSpec((1, Cp, TL), lambda n, l: (n, 0, l))
    if has_proj:
        kernel = functools.partial(_final_proj_kernel, cd=cd, c_split=Cp)
        args = (x_p, w1c_c, scale1, shift1, w2p_c, scale2, shift2, scale_s, shift_s)
    else:
        kernel = functools.partial(_final_identity_kernel, cd=cd)
        args = (x_p, w1p_c, scale1, shift1, w2p_c, scale2, shift2)

    out = pl.pallas_call(
        kernel,
        grid=(N, n_l),
        in_specs=[x_spec_f] + [const(a, 2) for a in args[1:]],
        out_specs=out_spec,
        out_shape=jax.ShapeDtypeStruct((N, Cp, L_pad), jnp.float32),
        compiler_params=cp_final,
    )(*args)

    return out[:, :C_out, :L]


# --------------------------------------------------------------------------------------
# Parameter init (torch-like) and pure-JAX reference for the correctness checks
# --------------------------------------------------------------------------------------

def init_params(key, c_in, c_out):
    """Conv1d(k=1) weight stored (C_out, C_in) (torch weight[:, :, 0]), bias (C_out,),
    BN gamma/beta (C_out,)."""
    ks = jax.random.split(key, 6)

    def conv_init(kw, kb, fan_in, fan_out):
        bound = float(fan_in) ** -0.5
        w = jax.random.uniform(kw, (fan_out, fan_in), jnp.float32, -bound, bound)
        b = jax.random.uniform(kb, (fan_out,), jnp.float32, -bound, bound)
        return w, b

    w1, b1 = conv_init(ks[0], ks[1], c_in, c_out)
    w2, b2 = conv_init(ks[2], ks[3], c_out, c_out)
    p = {"w1": w1, "b1": b1,
         "g1": jnp.ones((c_out,), jnp.float32), "be1": jnp.zeros((c_out,), jnp.float32),
         "w2": w2, "b2": b2,
         "g2": jnp.ones((c_out,), jnp.float32), "be2": jnp.zeros((c_out,), jnp.float32)}
    if c_in != c_out:
        ws, bs = conv_init(ks[4], ks[5], c_in, c_out)
        p.update({"ws": ws, "bs": bs,
                  "gs": jnp.ones((c_out,), jnp.float32),
                  "bes": jnp.zeros((c_out,), jnp.float32)})
    return p


def _reference(x_ncl, params):
    """Straightforward pure-JAX forward (keeps conv biases and two-pass BN variance) to
    validate the kernel's algebraic simplifications."""
    N, C_in, L = x_ncl.shape
    C_out = params["w1"].shape[0]
    x2d = jnp.transpose(x_ncl, (0, 2, 1)).reshape(N * L, C_in)

    def conv(x, w, b):
        return x @ w.T + b[None, :]

    def bn(h, g, be):
        mean = jnp.mean(h, axis=0, keepdims=True)
        var = jnp.mean((h - mean) ** 2, axis=0, keepdims=True)
        return (h - mean) * lax.rsqrt(var + EPS) * g[None, :] + be[None, :]

    h1 = conv(x2d, params["w1"], params["b1"])
    a1 = jnp.maximum(bn(h1, params["g1"], params["be1"]), 0.0)
    h2 = bn(conv(a1, params["w2"], params["b2"]), params["g2"], params["be2"])
    if C_in != C_out:
        sc = bn(conv(x2d, params["ws"], params["bs"]), params["gs"], params["bes"])
    else:
        sc = x2d
    out2d = jnp.maximum(h2 + sc, 0.0)
    return jnp.transpose(out2d.reshape(N, L, C_out), (0, 2, 1))


if __name__ == "__main__":
    key = jax.random.PRNGKey(0)
    k1, k2, k3, k4, k5, k6 = jax.random.split(key, 6)

    # 1) projection shortcut, ragged channels + ragged L (exercises channel/L padding,
    #    the bn2 padding mask, and the Gram-matrix stats path)
    N, C_in, C_out, L = 2, 3, 6, 16
    x = jax.random.normal(k1, (N, C_in, L), jnp.float32)
    p = init_params(k2, C_in, C_out)
    out = jax.block_until_ready(residual_block(x, p))
    assert out.shape == (N, C_out, L)
    assert jnp.allclose(out, _reference(x, p), atol=1e-4, rtol=1e-4), "projection mismatch"

    # 2) identity shortcut
    C = 8
    xi = jax.random.normal(k3, (N, C, L), jnp.float32)
    pi = init_params(k4, C, C)
    outi = jax.block_until_ready(residual_block(xi, pi))
    assert jnp.allclose(outi, _reference(xi, pi), atol=1e-4, rtol=1e-4), "identity mismatch"

    # 3) lane-dense multi-tile path (max_tl forces 4 L-tiles and the 2-way stats split)
    N2, C_in2, C_out2, L2 = 2, 8, 16, 512
    x2 = jax.random.normal(k5, (N2, C_in2, L2), jnp.float32)
    p2 = init_params(k2, C_in2, C_out2)
    out2 = jax.block_until_ready(residual_block(x2, p2, max_tl=128))
    ref2 = _reference(x2, p2)
    assert jnp.allclose(out2, ref2, atol=1e-3, rtol=1e-3), "multi-tile mismatch"

    # 4) bf16 MXU path (v6e/v7x throughput option) — looser tolerance is expected
    out_bf = jax.block_until_ready(residual_block(x2, p2, compute_dtype=jnp.bfloat16))
    assert jnp.allclose(out_bf, ref2, atol=1e-1, rtol=1e-1), "bf16 path mismatch"

    # 5) C_in > fused C_out: exercises the direct (non-Gram) pass-1 stats path
    N3, C_in3, C_out3, L3 = 2, 32, 8, 256
    x3 = jax.random.normal(k6, (N3, C_in3, L3), jnp.float32)
    p3 = init_params(k4, C_in3, C_out3)
    out3 = jax.block_until_ready(residual_block(x3, p3))
    assert jnp.allclose(out3, _reference(x3, p3), atol=1e-3, rtol=1e-3), "direct-stats mismatch"

    print("KERNEL_OK")
</pallas_src>

<mosaic_0001>
module attributes {stable_mosaic.version = 11 : i64} {
  func.func @_stats1_gram_kernel(%arg0: i32, %arg1: i32, %arg2: i32, %arg3: memref<1x3x128xf32, #tpu.memory_space<vmem>>, %arg4: memref<1x1x3x3xf32, #tpu.memory_space<vmem>>, %arg5: memref<1x1x3x128xf32, #tpu.memory_space<vmem>>) attributes {dimension_semantics = [#tpu.dimension_semantics<parallel>, #tpu.dimension_semantics<parallel>, #tpu.dimension_semantics<arbitrary>], iteration_bounds = array<i64: 1, 2, 1>, scalar_prefetch = 0 : i64, scratch_operands = 0 : i64, tpu.core_type = #tpu.core_type<tc>, window_params = [{transform_indices = @transform_0, window_bounds = array<i64: 1, 3, 128>}, {transform_indices = @transform_1, window_bounds = array<i64: 1, 1, 3, 3>}, {transform_indices = @transform_2, window_bounds = array<i64: 1, 1, 3, 128>}]} {
    %c0_i32 = arith.constant 0 : i32
    %0 = arith.cmpi eq, %arg2, %c0_i32 : i32
    %1 = arith.extui %0 : i1 to i32
    %c0_i32_0 = arith.constant 0 : i32
    %2 = arith.cmpi ne, %1, %c0_i32_0 : i32
    scf.if %2 {
      %cst_19 = arith.constant 0.000000e+00 : f32
      %18 = vector.broadcast %cst_19 : f32 to vector<1x1x3x3xf32>
      %c0_20 = arith.constant 0 : index
      %c0_21 = arith.constant 0 : index
      %c0_22 = arith.constant 0 : index
      %c0_23 = arith.constant 0 : index
      %19 = vector.load %arg4[%c0_20, %c0_21, %c0_22, %c0_23] : memref<1x1x3x3xf32, #tpu.memory_space<vmem>>, vector<1x1x3x3xf32>
      tpu.vector_store %arg4[%c0_20, %c0_21, %c0_22, %c0_23], %18 {strides = array<i32>} : memref<1x1x3x3xf32, #tpu.memory_space<vmem>>, vector<1x1x3x3xf32>,
      %cst_24 = arith.constant 0.000000e+00 : f32
      %20 = vector.broadcast %cst_24 : f32 to vector<1x1x3x128xf32>
      %c0_25 = arith.constant 0 : index
      %c0_26 = arith.constant 0 : index
      %c0_27 = arith.constant 0 : index
      %c0_28 = arith.constant 0 : index
      %21 = vector.load %arg5[%c0_25, %c0_26, %c0_27, %c0_28] : memref<1x1x3x128xf32, #tpu.memory_space<vmem>>, vector<1x1x3x128xf32>
      tpu.vector_store %arg5[%c0_25, %c0_26, %c0_27, %c0_28], %20 {strides = array<i32>} : memref<1x1x3x128xf32, #tpu.memory_space<vmem>>, vector<1x1x3x128xf32>,
    } else {
    }
    %c0 = arith.constant 0 : index
    %c0_1 = arith.constant 0 : index
    %c0_2 = arith.constant 0 : index
    %3 = vector.load %arg3[%c0, %c0_1, %c0_2] : memref<1x3x128xf32, #tpu.memory_space<vmem>>, vector<1x3x128xf32>
    %4 = vector.shape_cast %3 : vector<1x3x128xf32> to vector<3x128xf32>
    %c0_3 = arith.constant 0 : index
    %c0_4 = arith.constant 0 : index
    %c0_5 = arith.constant 0 : index
    %c0_6 = arith.constant 0 : index
    %5 = vector.load %arg4[%c0_3, %c0_4, %c0_5, %c0_6] : memref<1x1x3x3xf32, #tpu.memory_space<vmem>>, vector<1x1x3x3xf32>
    %6 = vector.shape_cast %5 : vector<1x1x3x3xf32> to vector<3x3xf32>
    %cst = arith.constant dense<0.000000e+00> : vector<3x3xf32>
    %7 = tpu.matmul %4, %4, %cst {dimension_numbers = #tpu.dot_dimension_numbers<[1], [1], [0], [0], [0, 0, 1, 0], [], []>} : vector<3x128xf32>, vector<3x128xf32>, vector<3x3xf32> -> vector<3x3xf32>
    %8 = arith.addf %6, %7 : vector<3x3xf32>
    %c0_7 = arith.constant 0 : index
    %c0_8 = arith.constant 0 : index
    %c0_9 = arith.constant 0 : index
    %c0_10 = arith.constant 0 : index
    %9 = vector.load %arg4[%c0_7, %c0_8, %c0_9, %c0_10] : memref<1x1x3x3xf32, #tpu.memory_space<vmem>>, vector<1x1x3x3xf32>
    %10 = vector.shape_cast %9 : vector<1x1x3x3xf32> to vector<3x3xf32>
    %11 = vector.shape_cast %8 : vector<3x3xf32> to vector<1x1x3x3xf32>
    tpu.vector_store %arg4[%c0_7, %c0_8, %c0_9, %c0_10], %11 {strides = array<i32>} : memref<1x1x3x3xf32, #tpu.memory_space<vmem>>, vector<1x1x3x3xf32>,
    %c0_11 = arith.constant 0 : index
    %c0_12 = arith.constant 0 : index
    %c0_13 = arith.constant 0 : index
    %c0_14 = arith.constant 0 : index
    %12 = vector.load %arg5[%c0_11, %c0_12, %c0_13, %c0_14] : memref<1x1x3x128xf32, #tpu.memory_space<vmem>>, vector<1x1x3x128xf32>
    %13 = vector.shape_cast %12 : vector<1x1x3x128xf32> to vector<3x128xf32>
    %14 = arith.addf %13, %4 : vector<3x128xf32>
    %c0_15 = arith.constant 0 : index
    %c0_16 = arith.constant 0 : index
    %c0_17 = arith.constant 0 : index
    %c0_18 = arith.constant 0 : index
    %15 = vector.load %arg5[%c0_15, %c0_16, %c0_17, %c0_18] : memref<1x1x3x128xf32, #tpu.memory_space<vmem>>, vector<1x1x3x128xf32>
    %16 = vector.shape_cast %15 : vector<1x1x3x128xf32> to vector<3x128xf32>
    %17 = vector.shape_cast %14 : vector<3x128xf32> to vector<1x1x3x128xf32>
    tpu.vector_store %arg5[%c0_15, %c0_16, %c0_17, %c0_18], %17 {strides = array<i32>} : memref<1x1x3x128xf32, #tpu.memory_space<vmem>>, vector<1x1x3x128xf32>,
    return
  }
  func.func @transform_0(%arg0: i32, %arg1: i32, %arg2: i32) -> (i32, i32, i32) {
    %c1_i32 = arith.constant 1 : i32
    %0 = arith.muli %arg0, %c1_i32 : i32
    %1 = arith.addi %0, %arg2 : i32
    %c0_i32 = arith.constant 0 : i32
    %c0_i32_0 = arith.constant 0 : i32
    return %arg1, %c0_i32, %1 : i32, i32, i32
  }
  func.func @transform_1(%arg0: i32, %arg1: i32, %arg2: i32) -> (i32, i32, i32, i32) {
    %c0_i32 = arith.constant 0 : i32
    %c0_i32_0 = arith.constant 0 : i32
    %c0_i32_1 = arith.constant 0 : i32
    return %arg0, %arg1, %c0_i32, %c0_i32_0 : i32, i32, i32, i32
  }
  func.func @transform_2(%arg0: i32, %arg1: i32, %arg2: i32) -> (i32, i32, i32, i32) {
    %c0_i32 = arith.constant 0 : i32
    %c0_i32_0 = arith.constant 0 : i32
    %c0_i32_1 = arith.constant 0 : i32
    return %arg0, %arg1, %c0_i32, %c0_i32_0 : i32, i32, i32, i32
  }
}

</mosaic_0001>

<bundles_post_ra>
// kernel: tpu_custom_call.1
= control target key start
LH: loop header
LB: loop body
LE: loop exit
PB: predicated region body
PF: predicated region fallthrough
CT: control target
= control target key end

     0   :  { %s447_s9 = smov 0   ;;  %s449_s10 = smov 0   ;;  %s482_s0 = inlined_call_operand.vmem [shape: f32[2,3,128], index: 0, kind: input, shape index: {}]   ;;  %s483_s1 = inlined_call_operand.vmem [shape: f32[1,2,3,3], index: 1, kind: output, shape index: {0}]   ;;  %s484_s2 = inlined_call_operand.vmem [shape: f32[1,2,3,128], index: 2, kind: output, shape index: {1}]  }
   0x1   :  { %s451_s11 = smov 0  }
   0x2 LB: > { %s28_s12 = sadd.s32 1, %s425_s10  ;;  %p376_p0 = scmp.ge.s32.totalorder %s429_s11, 1  ;;  %s429_s11 = sphi %s451_s11, %s13_s11   ;;  %s425_s10 = sphi %s449_s10, %s486_s10   ;;  %s421_s9 = sphi %s447_s9, %s485_s9  }
   0x3   : > { %p30_p1 = scmp.ge.s32.totalorder %s28_s12, 2  ;;  %p146_p2 = scmp.lt.s32.totalorder %s429_s11, 3 }
   0x5   : > { %s488_s12 = smov (%p30_p1, %s28_s12), 0  ;;  %p147_p3 = pnand %p376_p0, %p146_p2 }
   0x6   : > { %p183_p4 = scmp.lt.s32.totalorder (!%p147_p3), %s421_s9, 1 }
   0x7   : > { %150 = sbr.rel (%p147_p3) target bundleno = 148 (0x94), region = 24 }
   0xc   : > { %s490_s9 = smov (!%p183_p4, %s421_s9), 1  ;;  %vm211_vm0 = vcmask 18432   ;;  %v431_v0 = vmov 0.0  }
   0xd   : > { %s377_s13 = sshll.u32 %s490_s9, 2 }
   0xe   : > { %s189_s16 = scalar_lea.vmem %s482_s0, %s377_s13  ;;  %s206_s19 = scalar_lea.vmem %s484_s2, %s377_s13 }
   0xf   : > { %213 = vst [vmem:[%s206_s19] sm:$0x7] %v431_v0  ;;  %v214_v1 = vld [vmem:[%s189_s16] sm:$0x7]  ;;  %s198_s22 = scalar_lea.vmem %s483_s1, %s377_s13 }
  0x10   : > { %231 = vmatpush.xpose.msra.mxu0 %v214_v1  ;;  %212 = vst.msk [vmem:[%s198_s22] sm:$0x7] %vm211_vm0, %v431_v0 }
  0x13   : > { %232 = vmatmul.f32.vlgmr.msra.gmra.mxu0 %v214_v1 }
  0x16   : > { %v239_v2 = vld [vmem:[%s206_s19] sm:$0x7] }
  0x17   : > { %v240_v3 = vadd.f32 %v239_v2, %v214_v1  ;;  %v215_v4 = vld [vmem:[%s198_s22] sm:$0x7] }
  0x19   : > { %241 = vst [vmem:[%s206_s19] sm:$0x7] %v240_v3 }
  0x90   : > { %v233_v5 = vpop.f32.mrf.mxu0 }
  0x91   : > { %v236_v6 = vadd.f32 %v233_v5, %v215_v4 }
  0x93   : > { %238 = vst.msk [vmem:[%s198_s22] sm:$0x7] %vm211_vm0, %v236_v6 }
  0x94 PF: > { %s13_s11 = sadd.s32 1, %s429_s11   ;;  %s485_s9 = smov %s425_s10 }
  0x95   : > { %p10_p5 = scmp.ge.s32.totalorder %s13_s11, 4   ;;  %s486_s10 = smov %s488_s12 }
  0x97   :  { %12 = sbr.rel (!%p10_p5) target bundleno = 2 (0x2), region = 70 }

</bundles_post_ra>
